<compile_context>
chip_gen: v5e
topology: v5e:2x2
jax: 0.10.0
libtpu: 0.0.40
codegen_flags: <defaults>
</compile_context>

<pallas_src>
import functools

import jax
import jax.numpy as jnp
from jax.experimental import pallas as pl
from jax.experimental.pallas import tpu as pltpu


_VMEM_LIMIT_BYTES = 32 * 1024 * 1024  # == v7x default scoped limit, < 64 MiB physical


def _choose_spatial_tile(S, C, itemsize, target_buf_bytes=1 * 1024 * 1024,
                         max_tile=32768):
    """Spatial (lane) tile width: ~1 MiB per (C, TS) buffer, 128-aligned, and
    never larger than the 128-floored true spatial size (so blocks never exceed
    the array extent; the last tile may be ragged and is handled in-kernel)."""
    ts = (target_buf_bytes // max(1, C * itemsize)) // 128 * 128
    ts = max(128, min(ts, max_tile))
    if S < 128:
        return S                       # full-dim block (allowed by the layout rule)
    return min(ts, (S // 128) * 128)


# ---------------------------------------------------------------------------
# Pass 1: per-(batch, chunk) channel partial sums over spatial tiles.
# ---------------------------------------------------------------------------
def _channel_sum_kernel(x_ref, psum_ref, acc_ref, *, ts, s_total, tiles_per_chunk):
    s = pl.program_id(2)

    @pl.when(s == 0)
    def _():
        acc_ref[...] = jnp.zeros_like(acc_ref)

    # Global (unclamped) tile index.  The index_map clamps the DMA to the last
    # valid block; the mask below zeroes every out-of-range column (both the
    # ragged tail of the last tile and fully out-of-range tiles of the last chunk).
    tile = pl.program_id(1) * tiles_per_chunk + s
    start = tile * ts

    x = x_ref[0].astype(jnp.float32)                                  # (C, TS)
    col = jax.lax.broadcasted_iota(jnp.int32, x.shape, 1)
    x = jnp.where(col + start < s_total, x, 0.0)
    acc_ref[...] += jnp.sum(x, axis=1, keepdims=True)                 # (C, 1)

    @pl.when(s == pl.num_programs(2) - 1)
    def _():
        psum_ref[...] = acc_ref[...].astype(psum_ref.dtype).reshape(psum_ref.shape)


# ---------------------------------------------------------------------------
# Pass 2: apply cSE scale and sSE gate per spatial tile.
# ---------------------------------------------------------------------------
def _apply_kernel(x_ref, cse_ref, wc_ref, bc_ref, o_ref):
    x = x_ref[0]                                                      # (C, TS)
    # sSE: per-voxel channel dot = VPU multiply + sublane reduce (C is small for
    # SE blocks; avoid a degenerate (1,C)@(C,TS) MXU GEMV).  Accumulate in f32.
    logits = jnp.sum(x.astype(jnp.float32) * wc_ref[...], axis=0,
                     keepdims=True) + bc_ref[0]                       # (1, TS) f32
    sse = jax.nn.sigmoid(logits).astype(x.dtype)                      # (1, TS)
    cse = cse_ref[0].astype(x.dtype)                                  # (C, 1)
    # Gating multiplies + max stay in the input dtype (bf16 on v6e/v7x).
    o_ref[0] = jnp.maximum(x * cse, x * sse).astype(o_ref.dtype)


@functools.partial(jax.jit, static_argnames=("tile_cols",))
def channel_spatial_se_3d(x, w1, b1, w2, b2, wc, bc, *, tile_cols=None):
    """x: (B, C, D, H, W).  Params follow the torch module layouts:
       w1: (Cr, C)  b1: (Cr,)          (fc1)
       w2: (C, Cr)  b2: (C,)           (fc2)
       wc: (1, C, 1, 1, 1)  bc: (1,)   (1x1x1 conv, out_channels=1)
    """
    B, C, D, H, W = x.shape
    S = D * H * W
    x_flat = x.reshape(B, C, S)                        # true S: no pad, no copy

    ts = tile_cols if tile_cols is not None else _choose_spatial_tile(
        S, C, x.dtype.itemsize)
    ns = pl.cdiv(S, ts)                                # spatial tiles
    nchunk = 2 if ns >= 2 else 1                       # v7x dual-TensorCore split
    tpc = pl.cdiv(ns, nchunk)                          # tiles per chunk

    # ---- pass 1: partial channel sums -> (B, nchunk, C, 1) f32 ----
    psums = pl.pallas_call(
        functools.partial(_channel_sum_kernel, ts=ts, s_total=S,
                          tiles_per_chunk=tpc),
        out_shape=jax.ShapeDtypeStruct((B, nchunk, C, 1), jnp.float32),
        grid_spec=pltpu.PrefetchScalarGridSpec(
            num_scalar_prefetch=0,
            grid=(B, nchunk, tpc),
            in_specs=[
                pl.BlockSpec(
                    (1, C, ts),
                    lambda b, c, s: (b, 0, jnp.minimum(c * tpc + s, ns - 1))),
            ],
            out_specs=pl.BlockSpec((1, 1, C, 1), lambda b, c, s: (b, c, 0, 0)),
            scratch_shapes=[pltpu.VMEM((C, 1), jnp.float32)],
        ),
        compiler_params=pltpu.CompilerParams(
            dimension_semantics=("parallel", "parallel", "arbitrary"),
            vmem_limit_bytes=_VMEM_LIMIT_BYTES,
        ),
    )(x_flat)

    # ---- tiny cSE MLP hoisted to XLA: one small batched GEMM ----
    sums = jnp.sum(psums, axis=1)[..., 0]                             # (B, C)
    mean = sums / jnp.float32(S)                                      # true S
    hidden = jax.nn.relu(mean @ w1.astype(jnp.float32).T + b1.astype(jnp.float32))
    cse = jax.nn.sigmoid(hidden @ w2.astype(jnp.float32).T + b2.astype(jnp.float32))
    cse_col = cse[:, :, None]                                         # (B, C, 1) f32

    wc_col = wc.reshape(C, 1).astype(jnp.float32)
    bc_vec = bc.reshape(1).astype(jnp.float32)

    # ---- pass 2: apply cSE + sSE gates, tile by tile (true-shape output) ----
    out_flat = pl.pallas_call(
        _apply_kernel,
        out_shape=jax.ShapeDtypeStruct((B, C, S), x.dtype),
        grid_spec=pltpu.PrefetchScalarGridSpec(
            num_scalar_prefetch=0,
            grid=(B, ns),
            in_specs=[
                pl.BlockSpec((1, C, ts), lambda b, s: (b, 0, s)),
                pl.BlockSpec((1, C, 1), lambda b, s: (b, 0, 0)),
                pl.BlockSpec((C, 1), lambda b, s: (0, 0)),
                pl.BlockSpec(memory_space=pltpu.MemorySpace.SMEM),
            ],
            out_specs=pl.BlockSpec((1, C, ts), lambda b, s: (b, 0, s)),
        ),
        compiler_params=pltpu.CompilerParams(
            dimension_semantics=("parallel", "parallel"),
            vmem_limit_bytes=_VMEM_LIMIT_BYTES,
        ),
    )(x_flat, cse_col, wc_col, bc_vec)

    return out_flat.reshape(B, C, D, H, W)


def _reference(x, w1, b1, w2, b2, wc, bc):
    """Pure-JAX reference matching the PyTorch forward exactly."""
    B, C, D, H, W = x.shape
    xf = x.reshape(B, C, -1)
    # cSE
    squeeze = jnp.mean(xf, axis=-1)                                   # (B, C)
    h = jax.nn.relu(squeeze @ w1.T + b1)                              # (B, Cr)
    cse = jax.nn.sigmoid(h @ w2.T + b2)                               # (B, C)
    cse_out = x * cse[:, :, None, None, None]
    # sSE
    wv = wc.reshape(-1)                                               # (C,)
    sse = jax.nn.sigmoid(
        jnp.einsum("bcs,c->bs", xf, wv) + bc[0]).reshape(B, 1, D, H, W)
    return jnp.maximum(cse_out, x * sse)


if __name__ == "__main__":
    # Small deterministic example consistent with the module:
    # batch=2, channels=8 (reduction_ratio=2 -> 4 reduced), spatial 7x9x11
    # (S = 693, deliberately NOT a multiple of 128 -> exercises ragged tiles).
    B, C = 2, 8
    D, H, W = 7, 9, 11
    reduction_ratio = 2
    Cr = C // reduction_ratio

    key = jax.random.PRNGKey(0)
    kx, k1, k2, k3, k4, k5, k6 = jax.random.split(key, 7)

    x = jax.random.normal(kx, (B, C, D, H, W), dtype=jnp.float32)

    # Parameter shapes mirror the torch module:
    # fc1: Linear(C -> Cr), fc2: Linear(Cr -> C), conv: Conv3d(C -> 1, k=1)
    w1 = 0.3 * jax.random.normal(k1, (Cr, C), dtype=jnp.float32)
    b1 = 0.1 * jax.random.normal(k2, (Cr,), dtype=jnp.float32)
    w2 = 0.3 * jax.random.normal(k3, (C, Cr), dtype=jnp.float32)
    b2 = 0.1 * jax.random.normal(k4, (C,), dtype=jnp.float32)
    wc = 0.3 * jax.random.normal(k5, (1, C, 1, 1, 1), dtype=jnp.float32)
    bc = 0.1 * jax.random.normal(k6, (1,), dtype=jnp.float32)

    ref = _reference(x, w1, b1, w2, b2, wc, bc)

    # Default tiling: ragged last tile + dual-chunk reduce.
    out = jax.block_until_ready(channel_spatial_se_3d(x, w1, b1, w2, b2, wc, bc))
    assert out.shape == (B, C, D, H, W)
    assert jnp.allclose(out, ref, atol=1e-5, rtol=1e-5), "mismatch (default tile)"

    # Small explicit tile: multi-tile accumulation, fully-masked overflow tile in
    # the second reduce chunk, and Pallas-masked partial output stores.
    out_small = jax.block_until_ready(
        channel_spatial_se_3d(x, w1, b1, w2, b2, wc, bc, tile_cols=256))
    assert jnp.allclose(out_small, ref, atol=1e-5, rtol=1e-5), "mismatch (256 tile)"

    print("KERNEL_OK")
</pallas_src>

<mosaic_0001>
module attributes {stable_mosaic.version = 11 : i64} {
  func.func @_channel_sum_kernel(%arg0: i32, %arg1: i32, %arg2: i32, %arg3: memref<1x8x640xf32, #tpu.memory_space<vmem>>, %arg4: memref<1x1x8x1xf32, #tpu.memory_space<vmem>>, %arg5: memref<8x1xf32, #tpu.memory_space<vmem>>) attributes {dimension_semantics = [#tpu.dimension_semantics<parallel>, #tpu.dimension_semantics<parallel>, #tpu.dimension_semantics<arbitrary>], iteration_bounds = array<i64: 2, 2, 1>, scalar_prefetch = 0 : i64, scratch_operands = 1 : i64, tpu.core_type = #tpu.core_type<tc>, window_params = [{transform_indices = @transform_0, window_bounds = array<i64: 1, 8, 640>}, {transform_indices = @transform_1, window_bounds = array<i64: 1, 1, 8, 1>}]} {
    %c0_i32 = arith.constant 0 : i32
    %0 = arith.cmpi eq, %arg2, %c0_i32 : i32
    %1 = arith.extui %0 : i1 to i32
    %c0_i32_0 = arith.constant 0 : i32
    %2 = arith.cmpi ne, %1, %c0_i32_0 : i32
    scf.if %2 {
      %cst_10 = arith.constant 0.000000e+00 : f32
      %23 = vector.broadcast %cst_10 : f32 to vector<8x1xf32>
      %c0_11 = arith.constant 0 : index
      %c0_12 = arith.constant 0 : index
      %24 = vector.load %arg5[%c0_11, %c0_12] : memref<8x1xf32, #tpu.memory_space<vmem>>, vector<8x1xf32>
      tpu.vector_store %arg5[%c0_11, %c0_12], %23 {strides = array<i32>} : memref<8x1xf32, #tpu.memory_space<vmem>>, vector<8x1xf32>,
    } else {
    }
    %c1_i32 = arith.constant 1 : i32
    %3 = arith.muli %arg1, %c1_i32 : i32
    %4 = arith.addi %3, %arg2 : i32
    %c640_i32 = arith.constant 640 : i32
    %5 = arith.muli %4, %c640_i32 : i32
    %c0 = arith.constant 0 : index
    %c0_1 = arith.constant 0 : index
    %c0_2 = arith.constant 0 : index
    %6 = vector.load %arg3[%c0, %c0_1, %c0_2] : memref<1x8x640xf32, #tpu.memory_space<vmem>>, vector<1x8x640xf32>
    %7 = vector.shape_cast %6 : vector<1x8x640xf32> to vector<8x640xf32>
    %8 = tpu.iota {dimensions = array<i32: 1>} : vector<8x640xi32>
    %9 = vector.broadcast %5 : i32 to vector<8x640xi32>
    %10 = arith.addi %8, %9 : vector<8x640xi32>
    %c693_i32 = arith.constant 693 : i32
    %11 = vector.broadcast %c693_i32 : i32 to vector<8x640xi32>
    %12 = arith.cmpi slt, %10, %11 : vector<8x640xi32>
    %cst = arith.constant 0.000000e+00 : f32
    %13 = vector.broadcast %cst : f32 to vector<8x640xf32>
    %14 = arith.select %12, %7, %13 : vector<8x640xi1>, vector<8x640xf32>
    %c0_3 = arith.constant 0 : index
    %c0_4 = arith.constant 0 : index
    %15 = vector.load %arg5[%c0_3, %c0_4] : memref<8x1xf32, #tpu.memory_space<vmem>>, vector<8x1xf32>
    %cst_5 = arith.constant dense<0.000000e+00> : vector<8xf32>
    %16 = vector.multi_reduction <add>, %14, %cst_5 [1] : vector<8x640xf32> to vector<8xf32>
    %17 = vector.shape_cast %16 : vector<8xf32> to vector<8x1xf32>
    %18 = arith.addf %15, %17 : vector<8x1xf32>
    %c0_6 = arith.constant 0 : index
    %c0_7 = arith.constant 0 : index
    %19 = vector.load %arg5[%c0_6, %c0_7] : memref<8x1xf32, #tpu.memory_space<vmem>>, vector<8x1xf32>
    tpu.vector_store %arg5[%c0_6, %c0_7], %18 {strides = array<i32>} : memref<8x1xf32, #tpu.memory_space<vmem>>, vector<8x1xf32>,
    %c0_i32_8 = arith.constant 0 : i32
    %20 = arith.cmpi eq, %arg2, %c0_i32_8 : i32
    %21 = arith.extui %20 : i1 to i32
    %c0_i32_9 = arith.constant 0 : i32
    %22 = arith.cmpi ne, %21, %c0_i32_9 : i32
    scf.if %22 {
      %c0_10 = arith.constant 0 : index
      %c0_11 = arith.constant 0 : index
      %23 = vector.load %arg5[%c0_10, %c0_11] : memref<8x1xf32, #tpu.memory_space<vmem>>, vector<8x1xf32>
      %24 = vector.shape_cast %23 : vector<8x1xf32> to vector<1x1x8x1xf32>
      %c0_12 = arith.constant 0 : index
      %c0_13 = arith.constant 0 : index
      %c0_14 = arith.constant 0 : index
      %c0_15 = arith.constant 0 : index
      %25 = vector.load %arg4[%c0_12, %c0_13, %c0_14, %c0_15] : memref<1x1x8x1xf32, #tpu.memory_space<vmem>>, vector<1x1x8x1xf32>
      tpu.vector_store %arg4[%c0_12, %c0_13, %c0_14, %c0_15], %24 {strides = array<i32>} : memref<1x1x8x1xf32, #tpu.memory_space<vmem>>, vector<1x1x8x1xf32>,
    } else {
    }
    return
  }
  func.func @transform_0(%arg0: i32, %arg1: i32, %arg2: i32) -> (i32, i32, i32) {
    %c1_i32 = arith.constant 1 : i32
    %0 = arith.muli %arg1, %c1_i32 : i32
    %1 = arith.addi %0, %arg2 : i32
    %c1_i32_0 = arith.constant 1 : i32
    %2 = arith.minsi %1, %c1_i32_0 : i32
    %c0_i32 = arith.constant 0 : i32
    %c0_i32_1 = arith.constant 0 : i32
    return %arg0, %c0_i32, %2 : i32, i32, i32
  }
  func.func @transform_1(%arg0: i32, %arg1: i32, %arg2: i32) -> (i32, i32, i32, i32) {
    %c0_i32 = arith.constant 0 : i32
    %c0_i32_0 = arith.constant 0 : i32
    %c0_i32_1 = arith.constant 0 : i32
    return %arg0, %arg1, %c0_i32, %c0_i32_0 : i32, i32, i32, i32
  }
}

module attributes {stable_mosaic.version = 11 : i64} {
  func.func @_apply_kernel(%arg0: i32, %arg1: i32, %arg2: memref<1x8x640xf32, #tpu.memory_space<vmem>>, %arg3: memref<1x8x1xf32, #tpu.memory_space<vmem>>, %arg4: memref<8x1xf32, #tpu.memory_space<vmem>>, %arg5: memref<1xf32, #tpu.memory_space<smem>>, %arg6: memref<1x8x640xf32, #tpu.memory_space<vmem>>) attributes {dimension_semantics = [#tpu.dimension_semantics<parallel>, #tpu.dimension_semantics<parallel>], iteration_bounds = array<i64: 2, 2>, scalar_prefetch = 0 : i64, scratch_operands = 0 : i64, tpu.core_type = #tpu.core_type<tc>, window_params = [{transform_indices = @transform_0, window_bounds = array<i64: 1, 8, 640>}, {transform_indices = @transform_1, window_bounds = array<i64: 1, 8, 1>}, {pipeline_mode = #tpu.pipeline_mode<synchronous>, transform_indices = @transform_2, window_bounds = array<i64: 8, 1>}, {transform_indices = @transform_3, window_bounds = array<i64: 1>}, {transform_indices = @transform_4, window_bounds = array<i64: 1, 8, 640>}]} {
    %c0 = arith.constant 0 : index
    %c0_0 = arith.constant 0 : index
    %c0_1 = arith.constant 0 : index
    %0 = vector.load %arg2[%c0, %c0_0, %c0_1] : memref<1x8x640xf32, #tpu.memory_space<vmem>>, vector<1x8x640xf32>
    %1 = vector.shape_cast %0 : vector<1x8x640xf32> to vector<8x640xf32>
    %c0_2 = arith.constant 0 : index
    %c0_3 = arith.constant 0 : index
    %2 = vector.load %arg4[%c0_2, %c0_3] : memref<8x1xf32, #tpu.memory_space<vmem>>, vector<8x1xf32>
    %3 = vector.broadcast %2 : vector<8x1xf32> to vector<8x640xf32>
    %4 = arith.mulf %1, %3 : vector<8x640xf32>
    %cst = arith.constant dense<0.000000e+00> : vector<640xf32>
    %5 = vector.multi_reduction <add>, %4, %cst [0] : vector<8x640xf32> to vector<640xf32>
    %6 = vector.shape_cast %5 : vector<640xf32> to vector<1x640xf32>
    %c0_4 = arith.constant 0 : index
    %7 = memref.load %arg5[%c0_4] : memref<1xf32, #tpu.memory_space<smem>>
    %8 = vector.broadcast %7 : f32 to vector<1x640xf32>
    %9 = arith.addf %6, %8 : vector<1x640xf32>
    %10 = arith.negf %9 : vector<1x640xf32>
    %11 = math.exp %10 : vector<1x640xf32>
    %cst_5 = arith.constant 1.000000e+00 : f32
    %12 = vector.broadcast %cst_5 : f32 to vector<1x640xf32>
    %13 = arith.addf %12, %11 : vector<1x640xf32>
    %14 = arith.divf %12, %13 : vector<1x640xf32>
    %c0_6 = arith.constant 0 : index
    %c0_7 = arith.constant 0 : index
    %c0_8 = arith.constant 0 : index
    %15 = vector.load %arg3[%c0_6, %c0_7, %c0_8] : memref<1x8x1xf32, #tpu.memory_space<vmem>>, vector<1x8x1xf32>
    %16 = vector.shape_cast %15 : vector<1x8x1xf32> to vector<8x1xf32>
    %17 = vector.broadcast %16 : vector<8x1xf32> to vector<8x640xf32>
    %18 = arith.mulf %1, %17 : vector<8x640xf32>
    %19 = vector.broadcast %14 : vector<1x640xf32> to vector<8x640xf32>
    %20 = arith.mulf %1, %19 : vector<8x640xf32>
    %21 = arith.maximumf %18, %20 : vector<8x640xf32>
    %c0_9 = arith.constant 0 : index
    %c0_10 = arith.constant 0 : index
    %c0_11 = arith.constant 0 : index
    %22 = vector.load %arg6[%c0_9, %c0_10, %c0_11] : memref<1x8x640xf32, #tpu.memory_space<vmem>>, vector<1x8x640xf32>
    %23 = vector.shape_cast %22 : vector<1x8x640xf32> to vector<8x640xf32>
    %24 = vector.shape_cast %21 : vector<8x640xf32> to vector<1x8x640xf32>
    tpu.vector_store %arg6[%c0_9, %c0_10, %c0_11], %24 {strides = array<i32>} : memref<1x8x640xf32, #tpu.memory_space<vmem>>, vector<1x8x640xf32>,
    return
  }
  func.func @transform_0(%arg0: i32, %arg1: i32) -> (i32, i32, i32) {
    %c0_i32 = arith.constant 0 : i32
    %c0_i32_0 = arith.constant 0 : i32
    return %arg0, %c0_i32, %arg1 : i32, i32, i32
  }
  func.func @transform_1(%arg0: i32, %arg1: i32) -> (i32, i32, i32) {
    %c0_i32 = arith.constant 0 : i32
    %c0_i32_0 = arith.constant 0 : i32
    %c0_i32_1 = arith.constant 0 : i32
    return %arg0, %c0_i32, %c0_i32_0 : i32, i32, i32
  }
  func.func @transform_2(%arg0: i32, %arg1: i32) -> (i32, i32) {
    %c0_i32 = arith.constant 0 : i32
    %c0_i32_0 = arith.constant 0 : i32
    %c0_i32_1 = arith.constant 0 : i32
    return %c0_i32, %c0_i32_0 : i32, i32
  }
  func.func @transform_3(%arg0: i32, %arg1: i32) -> i32 {
    %c0_i32 = arith.constant 0 : i32
    %c0_i32_0 = arith.constant 0 : i32
    return %c0_i32 : i32
  }
  func.func @transform_4(%arg0: i32, %arg1: i32) -> (i32, i32, i32) {
    %c0_i32 = arith.constant 0 : i32
    %c0_i32_0 = arith.constant 0 : i32
    return %arg0, %c0_i32, %arg1 : i32, i32, i32
  }
}

</mosaic_0001>

<bundles_post_ra>
// kernel: channel_spatial_se_3d.2
= control target key start
LH: loop header
LB: loop body
LE: loop exit
PB: predicated region body
PF: predicated region fallthrough
CT: control target
= control target key end

     0   :  { %s443_s6 = smov 0   ;;  %s445_s7 = smov 0   ;;  %s505_s0 = inlined_call_operand.vmem [shape: f32[2,8,693], index: 0, kind: input, shape index: {}]   ;;  %s506_s1 = inlined_call_operand.vmem [shape: f32[2,2,8,1], index: 1, kind: output, shape index: {}]  }
   0x1   :  { %s447_s8 = smov 0   ;;  %s449_s9 = smov 0  }
   0x2   :  { %s451_s10 = smov 0  }
   0x3 LB: > { %s26_s11 = sadd.s32 1, %s422_s8  ;;  %s30_s12 = sadd.s32 1, %s426_s9  ;;  %s430_s10 = sphi %s451_s10, %s11_s10   ;;  %s426_s9 = sphi %s449_s9, %s510_s9   ;;  %s422_s8 = sphi %s447_s8, %s509_s8   ;;  %s418_s7 = sphi %s445_s7, %s508_s7   ;;  %s414_s6 = sphi %s443_s6, %s507_s6  }
   0x4   : > { %p28_p0 = scmp.ge.s32.totalorder %s26_s11, 2  ;;  %p344_p1 = scmp.ge.s32.totalorder %s430_s10, 1 }
   0x5   : > { %p135_p2 = scmp.lt.s32.totalorder %s430_s10, 5 }
   0x6   : > { %s512_s11 = smov (%p28_p0, %s26_s11), 0  ;;  %s514_s12 = smov (!%p28_p0, %s30_s12), %s426_s9 }
   0x7   : > { %p136_p3 = pnand %p344_p1, %p135_p2  ;;  %p32_p4 = scmp.ge.s32.totalorder %s514_s12, 2 }
   0x8   : > { %p170_p5 = scmp.lt.s32.totalorder (!%p136_p3), %s414_s6, 1  ;;  %p177_p6 = scmp.lt.s32.totalorder (!%p136_p3), %s418_s7, 1 }
   0x9   : > { %s516_s12 = smov (%p32_p4, %s514_s12), 0  ;;  %139 = sbr.rel (%p136_p3) target bundleno = 160 (0xa0), region = 24 }
   0xa   : > { %s208_s13 = smul.u32 (!%p136_p3), 640, %s414_s6 }
   0xe   : > { %v214_v0 = vlaneseq  ;;  %vm205_vm0 = vcmask 7168   ;;  %v432_v1 = vmov 0.0   ;;  %s518_s6 = smov (!%p170_p5, %s414_s6), 1  ;;  %s520_s7 = smov (!%p177_p6, %s418_s7), 1  ;;  %v220_v5 = vstv %s208_s13 }
   0xf   : > { %206 = vst.msk [vmem:[#allocation2] sm:$0xff] %vm205_vm0, %v432_v1  ;;  %s172_s14 = smul.u32 5, %s518_s6  ;;  %s346_s16 = sshll.u32 %s520_s7, 1 }
  0x10   : > { %v215_v2 = vand.u32 127, %v214_v0  ;;  %s350_s15 = smul.u32 6, %s520_s7  ;;  %s479_s17 = sadd.s32 %s346_s16, %s518_s6 }
  0x11   : > { %p179_p7 = scmp.lt.s32.totalorder %s172_s14, 5  ;;  %s347_s23 = sshll.u32 %s479_s17, 3 }
  0x12   : > { %v216_v3 = vadd.s32 128, %v215_v2  ;;  %v217_v4 = vadd.s32 256, %v215_v2  ;;  %v218_v6 = vadd.s32 384, %v215_v2  ;;  %v219_v7 = vadd.s32 512, %v215_v2  ;;  %s200_s26 = scalar_lea.vmem %s506_s1, %s347_s23 }
  0x13   : > { %v221_v8 = vadd.s32 %v220_v5, %v215_v2  ;;  %s522_s14 = smov (!%p179_p7, %s172_s14), 5 }
  0x14   : > { %v222_v9 = vadd.s32 %v220_v5, %v216_v3  ;;  %v223_v10 = vadd.s32 %v220_v5, %v217_v4  ;;  %v224_v11 = vadd.s32 %v220_v5, %v218_v6  ;;  %s182_s18 = sadd.s32 %s350_s15, %s522_s14  ;;  %v225_v12 = vadd.s32 %v220_v5, %v219_v7 }
  0x15   : > { %s345_s19 = sshll.u32 %s182_s18, 3  ;;  %vm226_vm1 = vcmp.lt.s32.totalorder %v221_v8, 693 }
  0x16   : > { %vm227_vm2 = vcmp.lt.s32.totalorder %v222_v9, 693  ;;  %vm228_vm3 = vcmp.lt.s32.totalorder %v223_v10, 693  ;;  %s184_s22 = scalar_lea.vmem %s505_s0, %s345_s19  ;;  %vm229_vm4 = vcmp.lt.s32.totalorder %v224_v11, 693  ;;  %vm230_vm5 = vcmp.lt.s32.totalorder %v225_v12, 693  ;;  %v236_v27 = vld [vmem:[#allocation2] sm:$0xff] }
  0x17   : > { %v209_v13 = vld [vmem:[%s184_s22] sm:$0xff]  ;;  %v210_v14 = vld [vmem:[%s184_s22 + $0x8] sm:$0xff]  ;;  %v211_v15 = vld [vmem:[%s184_s22 + $0x10] sm:$0xff] }
  0x18   : > { %v212_v16 = vld [vmem:[%s184_s22 + $0x18] sm:$0xff]  ;;  %v231_v17 = vsel %vm226_vm1, %v209_v13, 0.0  ;;  %v232_v18 = vsel %vm227_vm2, %v210_v14, 0.0  ;;  %v233_v19 = vsel %vm228_vm3, %v211_v15, 0.0  ;;  %v213_v20 = vld [vmem:[%s184_s22 + $0x20] sm:$0xff] }
  0x19   : > { %v237_v21 = vadd.f32 %v232_v18, %v231_v17  ;;  %v234_v22 = vsel %vm229_vm4, %v212_v16, 0.0  ;;  %v235_v24 = vsel %vm230_vm5, %v213_v20, 0.0 }
  0x1b   : > { %v238_v23 = vadd.f32 %v237_v21, %v233_v19 }
  0x1d   : > { %v239_v25 = vadd.f32 %v238_v23, %v234_v22 }
  0x1f   : > { %v240_v26 = vadd.f32 %v239_v25, %v235_v24 }
  0x21   : > { %241 = vadd.xlane.f32.xlu0 %v240_v26 }
  0x94   : > { %v242_v28 = vpop.xlane.xlu0 %241 }
  0x95   : > { %v243_v29 = vadd.f32 %v242_v28, %v236_v27 }
  0x97   : > { %245 = vst.msk [vmem:[#allocation2] sm:$0xff] %vm205_vm0, %v243_v29 }
  0x9e   : > { %v249_v30 = vld [vmem:[#allocation2] sm:$0xff] }
  0x9f   : > { %250 = vst.msk [vmem:[%s200_s26] sm:$0xff] %vm205_vm0, %v249_v30 }
  0xa0 PF: > { %s11_s10 = sadd.s32 1, %s430_s10   ;;  %s507_s6 = smov %s422_s8 }
  0xa1   : > { %p8_p8 = scmp.ge.s32.totalorder %s11_s10, 6   ;;  %s508_s7 = smov %s426_s9 }
  0xa2   : > { %s509_s8 = smov %s512_s11  ;;  %s510_s9 = smov %s516_s12 }
  0xa3   :  { %10 = sbr.rel (!%p8_p8) target bundleno = 3 (0x3), region = 62 }

// kernel: channel_spatial_se_3d.3
= control target key start
LH: loop header
LB: loop body
LE: loop exit
PB: predicated region body
PF: predicated region fallthrough
CT: control target
= control target key end

     0   :  { %s1849_s0 = inlined_call_operand.vmem [shape: f32[2,8,693], index: 0, kind: input, shape index: {}]   ;;  %s1850_s1 = inlined_call_operand.vmem [shape: f32[2,8,1], index: 1, kind: input, shape index: {}]   ;;  %s1851_s2 = inlined_call_operand.vmem [shape: f32[8,1], index: 2, kind: input, shape index: {}]   ;;  %s1852_s3 = inlined_call_operand.<no memory space> [shape: f32[1], index: 3, kind: input, shape index: {}]   ;;  %s1853_s4 = inlined_call_operand.vmem [shape: f32[2,8,693], index: 4, kind: output, shape index: {}]  }
   0x1   :  { %9 = sst [smem:[#allocation2]] %s1852_s3 }
   0x2   :  { %s1359_s17 = smov 0   ;;  %s1361_s18 = smov 0  }
   0x3   :  { %s1363_s19 = smov 0   ;;  %s1365_s20 = smov 0  }
   0x4   :  { %s1367_s21 = smov 0   ;;  %s1369_s22 = smov 0  }
   0x5   :  { %s1371_s23 = smov 0  }
   0x6 LB: > { %s24_s3 = sadd.s32 1, %s1254_s21  ;;  %s27_s24 = sadd.s32 1, %s1258_s22  ;;  %s1262_s23 = sphi %s1371_s23, %s15_s23   ;;  %s1258_s22 = sphi %s1369_s22, %s1877_s22   ;;  %s1254_s21 = sphi %s1367_s21, %s1876_s21   ;;  %s1250_s20 = sphi %s1365_s20, %s1875_s20   ;;  %s1246_s19 = sphi %s1363_s19, %s1874_s19   ;;  %s1242_s18 = sphi %s1361_s18, %s1873_s18   ;;  %s1238_s17 = sphi %s1359_s17, %s1872_s17  }
   0x7   : > { %p25_p0 = scmp.ge.s32.totalorder %s24_s3, 2  ;;  %s888_s25 = sadd.s32 4294967295, %s1262_s23  }
   0x8   : > { %p142_p1 = scmp.ne.s32.totalorder %s1242_s18, %s1238_s17  ;;  %p143_p2 = scmp.eq.s32.totalorder %s888_s25, 3 }
   0x9   : > { %s1879_s3 = smov (%p25_p0, %s24_s3), 0  ;;  %s1881_s24 = smov (!%p25_p0, %s27_s24), %s1258_s22 }
   0xa   : > { %s128_s26 = ssub.s32 %s1254_s21, %s1879_s3  ;;  %p29_p3 = scmp.ge.s32.totalorder %s1881_s24, 2 }
   0xb   : > { %p892_p4 = scmp.ge.s32.totalorder %s1262_s23, 1  ;;  %p1405_p5 = por %p143_p2, %p142_p1 }
   0xc   : > { %p201_p6 = scmp.lt.s32.totalorder %s1262_s23, 5  ;;  %s1883_s24 = smov (%p29_p3, %s1881_s24), 0 }
   0xd   : > { %s127_s28 = ssub.s32 %s1258_s22, %s1883_s24  ;;  %s132_s30 = sadd.s32 1, %s1242_s18 }
   0xe   : > { %p202_p7 = pnand %p892_p4, %p201_p6  ;;  %s129_s29 = sor.u32 %s128_s26, %s127_s28 }
   0xf   : > { %p130_p8 = scmp.eq.s32.totalorder %s129_s29, 0  ;;  %p243_p9 = scmp.lt.s32.totalorder (!%p202_p7), %s1250_s20, 1 }
  0x10   : > { %205 = sbr.rel (%p202_p7) target bundleno = 339 (0x153), region = 36 }
  0x11   : > { %s1416_s5 = scalar_select %p130_p8, %s1242_s18, %s132_s30  }
  0x12   : > { %s1427_s13 = smul.u32 (!%p202_p7), 5, %s1246_s19  ;;  %s311_s19 = sld [smem:[#allocation2]] (!%p202_p7) }
  0x13   : > { %s235_s30 = sand.u32 (!%p202_p7), 1, %s1238_s17  }
  0x14   : > { %p245_p10 = scmp.lt.s32.totalorder (!%p202_p7), %s1427_s13, 5  ;;  %s1503_s6 = smul.u32 (!%p202_p7), 40, %s235_s30 }
  0x15   : > { %v270_v0 = vld [vmem:[%s1851_s2] sm:$0xff]  ;;  %v1328_v1 = vmov 0   ;;  %s244_s8 = scalar_select %p243_p9, %s1250_s20, 1 }
  0x16   : > { %1123 = vset.pattern.permute.xlu0 %v1328_v1  ;;  %s246_s15 = scalar_select %p245_p10, %s1427_s13, 5 }
  0x17   : > { %273 = vperm.xlu0 %1123, %v270_v0   ;;  %s894_s9 = sshll.u32 %s244_s8, 3  ;;  %s934_s14 = smul.u32 6, %s244_s8 }
  0x18   : > { %s259_s12 = scalar_lea.vmem %s1850_s1, %s894_s9  ;;  %v312_v38 = vstv %s311_s19  ;;  %s1531_s17 = scalar_lea.vmem [#allocation3], %s1503_s6  }
  0x19   : > { %v413_v2 = vld [vmem:[%s259_s12] sm:$0xff]  ;;  %s248_s16 = sadd.s32 %s934_s14, %s246_s15  ;;  %s447_s7 = ssub.s32 (%p1405_p5), 6, %s1427_s13 }
  0x1a   : > { %s893_s25 = sshll.u32 %s248_s16, 3  ;;  %s935_s8 = smul.u32 (%p1405_p5), 6, %s1250_s20 }
  0x1b   : > { %s250_s29 = scalar_lea.vmem %s1849_s0, %s893_s25  ;;  %p448_p11 = scmp.lt.s32.totalorder (%p1405_p5), %s447_s7, 5 }
  0x1c   : > { %v1434_v3 = vld [vmem:[%s250_s29] sm:$0xff]  ;;  %v1436_v4 = vld [vmem:[%s250_s29 + $0x8] sm:$0xff]  ;;  %v1438_v5 = vld [vmem:[%s250_s29 + $0x10] sm:$0xff]  ;;  %s453_s9 = sadd.s32 (%p1405_p5), %s935_s8, %s1427_s13 }
  0x1d   : > { %v1440_v6 = vld [vmem:[%s250_s29 + $0x18] sm:$0xff]  ;;  %v1442_v7 = vld [vmem:[%s250_s29 + $0x20] sm:$0xff]  ;;  %s902_s10 = sshll.u32 (%p1405_p5), %s453_s9, 3 }
  0x1e   : > { %s1552_s15 = scalar_lea.vmem (%p1405_p5), %s1853_s4, %s902_s10  }
  0x1f   : > { %416 = vperm.xlu0 %1123, %v413_v2  }
  0x89   : > { %v274_v8 = vpop.permute.xlu0 %273 }
  0x8a   : > { %v276_v9 = vmul.f32 %v274_v8, %v1434_v3  ;;  %v277_v10 = vmul.f32 %v274_v8, %v1436_v4  ;;  %v278_v11 = vmul.f32 %v274_v8, %v1438_v5  ;;  %v279_v12 = vmul.f32 %v274_v8, %v1440_v6 }
  0x8b   : > { %v280_v13 = vmul.f32 %v274_v8, %v1442_v7 }
  0x8c   : > { %v281_v14 = vrot.slane %v276_v9, 4  ;;  %v287_v15 = vrot.slane %v277_v10, 4  ;;  %v293_v16 = vrot.slane %v278_v11, 4  ;;  %v299_v17 = vrot.slane %v279_v12, 4 }
  0x8d   : > { %v305_v18 = vrot.slane %v280_v13, 4 }
  0x8e   : > { %v282_v19 = vadd.f32 %v281_v14, %v276_v9  ;;  %v288_v20 = vadd.f32 %v287_v15, %v277_v10  ;;  %v294_v21 = vadd.f32 %v293_v16, %v278_v11  ;;  %v300_v22 = vadd.f32 %v299_v17, %v279_v12 }
  0x8f   : > { %v306_v23 = vadd.f32 %v305_v18, %v280_v13 }
  0x90   : > { %v283_v24 = vrot.slane %v282_v19, 2  ;;  %v289_v25 = vrot.slane %v288_v20, 2  ;;  %v295_v26 = vrot.slane %v294_v21, 2  ;;  %v301_v27 = vrot.slane %v300_v22, 2 }
  0x91   : > { %v307_v28 = vrot.slane %v306_v23, 2  ;;  %v1456_v0 = vpop.permute.xlu0 %416 }
  0x92   : > { %v284_v29 = vadd.f32 %v283_v24, %v282_v19  ;;  %v290_v30 = vadd.f32 %v289_v25, %v288_v20  ;;  %v296_v31 = vadd.f32 %v295_v26, %v294_v21  ;;  %v302_v32 = vadd.f32 %v301_v27, %v300_v22 }
  0x93   : > { %v308_v33 = vadd.f32 %v307_v28, %v306_v23  ;;  %v1466_v11 = vmul.f32 %v1456_v0, %v1434_v3  ;;  %v1472_v14 = vmul.f32 %v1456_v0, %v1436_v4  ;;  %v1476_v15 = vmul.f32 %v1456_v0, %v1438_v5 }
  0x94   : > { %v285_v34 = vrot.slane %v284_v29, 1  ;;  %v291_v35 = vrot.slane %v290_v30, 1  ;;  %v297_v36 = vrot.slane %v296_v31, 1  ;;  %v303_v37 = vrot.slane %v302_v32, 1 }
  0x95   : > { %v309_v39 = vrot.slane %v308_v33, 1 }
  0x96   : > { %v286_v40 = vadd.f32 %v285_v34, %v284_v29  ;;  %v292_v41 = vadd.f32 %v291_v35, %v290_v30  ;;  %v298_v42 = vadd.f32 %v297_v36, %v296_v31  ;;  %v304_v43 = vadd.f32 %v303_v37, %v302_v32 }
  0x97   : > { %v310_v44 = vadd.f32 %v309_v39, %v308_v33 }
  0x98   : > { %v313_v45 = vadd.f32 %v312_v38, %v286_v40  ;;  %v314_v46 = vadd.f32 %v312_v38, %v292_v41  ;;  %v315_v47 = vadd.f32 %v312_v38, %v298_v42  ;;  %v316_v48 = vadd.f32 %v312_v38, %v304_v43 }
  0x99   : > { %v317_v49 = vadd.f32 %v312_v38, %v310_v44 }
  0x9a   : > { %v895_v50 = vmul.f32 -1.442695, %v313_v45  ;;  %v896_v51 = vmul.f32 -1.442695, %v314_v46  ;;  %v897_v52 = vmul.f32 -1.442695, %v315_v47 }
  0x9b   : > { %v898_v53 = vmul.f32 -1.442695, %v316_v48  ;;  %v899_v54 = vmul.f32 -1.442695, %v317_v49 }
  0x9c   : > { %1124 = vpow2.f32 %v895_v50 }
  0x9d   : > { %1126 = vpow2.f32 %v896_v51 }
  0x9e   : > { %1128 = vpow2.f32 %v897_v52 }
  0x9f   : > { %1130 = vpow2.f32 %v898_v53 }
  0xa0   : > { %1132 = vpow2.f32 %v899_v54 }
  0xa2   : > { %v1125_v55 = vpop.eup %1124 }
  0xa3   : > { %v1127_v56 = vpop.eup %1126  ;;  %v333_v57 = vadd.f32 1.0, %v1125_v55 }
  0xa4   : > { %v1129_v58 = vpop.eup %1128  ;;  %v1449_v59 = vadd.f32 1.0, %v1127_v56 }
  0xa5   : > { %v1131_v60 = vpop.eup %1130  ;;  %v1451_v61 = vadd.f32 1.0, %v1129_v58  ;;  %1134 = vrcp.f32 %v333_v57  ;;  %v347_v2 = vand.u32 2147483647, %v333_v57  ;;  %v349_v8 = vand.u32 2147483648, %v333_v57 }
  0xa6   : > { %v1133_v62 = vpop.eup %1132  ;;  %v1453_v63 = vadd.f32 1.0, %v1131_v60  ;;  %1136 = vrcp.f32 %v1449_v59  ;;  %v362_v9 = vand.u32 2147483647, %v1449_v59  ;;  %v364_v10 = vand.u32 2147483648, %v1449_v59 }
  0xa7   : > { %v1458_v1 = vadd.f32 1.0, %v1133_v62  ;;  %1138 = vrcp.f32 %v1451_v61  ;;  %v377_v13 = vand.u32 2147483647, %v1451_v61  ;;  %vm343_vm0 = vweird.f32 %v333_v57 }
  0xa8   : > { %1140 = vrcp.f32 %v1453_v63  ;;  %vm358_vm1 = vweird.f32 %v1449_v59  ;;  %v379_v18 = vand.u32 2147483648, %v1451_v61  ;;  %vm1480_vm2 = vcmp.eq.f32.partialorder %v347_v2, 8.507059e+37 }
  0xa9   : > { %1142 = vrcp.f32 %v1458_v1  ;;  %v350_v20 = vor.u32 1.1754944e-38, %v349_v8  ;;  %vm373_vm3 = vweird.f32 %v1451_v61  ;;  %vm1486_vm4 = vcmp.eq.f32.partialorder %v362_v9, 8.507059e+37 }
  0xaa   : > { %v365_v25 = vor.u32 1.1754944e-38, %v364_v10  ;;  %vm388_vm5 = vweird.f32 %v1453_v63  ;;  %vm1492_vm6 = vcmp.eq.f32.partialorder %v377_v13, 8.507059e+37  ;;  %v392_v30 = vand.u32 2147483647, %v1453_v63 }
  0xab   : > { %v1135_v12 = vpop.eup %1134  ;;  %v394_v31 = vand.u32 2147483648, %v1453_v63  ;;  %v380_v33 = vor.u32 1.1754944e-38, %v379_v18  ;;  %vm403_vm9 = vweird.f32 %v1458_v1  ;;  %v407_v41 = vand.u32 2147483647, %v1458_v1 }
  0xac   : > { %v1137_v16 = vpop.eup %1136  ;;  %v339_v17 = vmul.f32 %v1135_v12, %v333_v57  ;;  %vm344_vm7 = vweird.f32 %v1135_v12  ;;  %v409_v44 = vand.u32 2147483648, %v1458_v1  ;;  %v423_v10 = vmul.f32 %v1456_v0, %v1442_v7 }
  0xad   : > { %v354_v21 = vmul.f32 %v1137_v16, %v1449_v59  ;;  %v1139_v22 = vpop.eup %1138  ;;  %vm359_vm8 = vweird.f32 %v1137_v16  ;;  %vm345_vm10 = vmor %vm343_vm0, %vm344_vm7  ;;  %v395_v56 = vor.u32 1.1754944e-38, %v394_v31 }
  0xae   : > { %v340_v23 = vsub.f32 1.0, %v339_v17  ;;  %v1141_v26 = vpop.eup %1140  ;;  %v369_v28 = vmul.f32 %v1139_v22, %v1451_v61  ;;  %vm374_vm11 = vweird.f32 %v1139_v22  ;;  %vm360_vm12 = vmor %vm358_vm1, %vm359_vm8  ;;  %vm393_vm1 = vcmp.eq.f32.partialorder %v392_v30, 8.507059e+37 }
  0xaf   : > { %v355_v27 = vsub.f32 1.0, %v354_v21  ;;  %v384_v34 = vmul.f32 %v1141_v26, %v1453_v63  ;;  %v1143_v35 = vpop.eup %1142  ;;  %vm389_vm13 = vweird.f32 %v1141_v26  ;;  %vm375_vm15 = vmor %vm373_vm3, %vm374_vm11  ;;  %vm408_vm3 = vcmp.eq.f32.partialorder %v407_v41, 8.507059e+37 }
  0xb0   : > { %v341_v32 = vmul.f32 %v1135_v12, %v340_v23  ;;  %v370_v37 = vsub.f32 1.0, %v369_v28  ;;  %v399_v40 = vmul.f32 %v1143_v35, %v1458_v1  ;;  %vm404_vm14 = vweird.f32 %v1143_v35  ;;  %vm390_vm0 = vmor %vm388_vm5, %vm389_vm13 }
  0xb1   : > { %v356_v36 = vmul.f32 %v1137_v16, %v355_v27  ;;  %v385_v39 = vsub.f32 1.0, %v384_v34 }
  0xb2   : > { %v342_v38 = vadd.f32 %v1135_v12, %v341_v32  ;;  %v371_v43 = vmul.f32 %v1139_v22, %v370_v37  ;;  %v400_v47 = vsub.f32 1.0, %v399_v40 }
  0xb3   : > { %v357_v42 = vadd.f32 %v1137_v16, %v356_v36  ;;  %v386_v46 = vmul.f32 %v1141_v26, %v385_v39 }
  0xb4   : > { %v346_v45 = vsel %vm345_vm10, %v1135_v12, %v342_v38  ;;  %v372_v50 = vadd.f32 %v1139_v22, %v371_v43  ;;  %v401_v53 = vmul.f32 %v1143_v35, %v400_v47 }
  0xb5   : > { %v351_v48 = vsel %vm1480_vm2, %v350_v20, %v346_v45  ;;  %v361_v49 = vsel %vm360_vm12, %v1137_v16, %v357_v42  ;;  %v387_v52 = vadd.f32 %v1141_v26, %v386_v46  ;;  %vm405_vm2 = vmor %vm403_vm9, %vm404_vm14 }
  0xb6   : > { %v366_v51 = vsel %vm1486_vm4, %v365_v25, %v361_v49  ;;  %v424_v54 = vmul.f32 %v351_v48, %v1434_v3  ;;  %v376_v55 = vsel %vm375_vm15, %v1139_v22, %v372_v50  ;;  %v402_v60 = vadd.f32 %v1143_v35, %v401_v53 }
  0xb7   : > { %v425_v57 = vmul.f32 %v366_v51, %v1436_v4  ;;  %v381_v58 = vsel %vm1492_vm6, %v380_v33, %v376_v55  ;;  %v391_v59 = vsel %vm390_vm0, %v1141_v26, %v387_v52  ;;  %v410_v3 = vor.u32 1.1754944e-38, %v409_v44 }
  0xb8   : > { %v429_v61 = vmax.f32 %v1466_v11, %v424_v54  ;;  %v396_v62 = vsel %vm393_vm1, %v395_v56, %v391_v59  ;;  %v426_v63 = vmul.f32 %v381_v58, %v1438_v5  ;;  %v406_v8 = vsel %vm405_vm2, %v1143_v35, %v402_v60 }
  0xb9   : > { %v430_v2 = vmax.f32 %v1472_v14, %v425_v57  ;;  %v422_v4 = vmul.f32 %v1456_v0, %v1440_v6  ;;  %v427_v9 = vmul.f32 %v396_v62, %v1440_v6  ;;  %v411_v1 = vsel %vm408_vm3, %v410_v3, %v406_v8 }
  0xba   : > { %434 = vst [vmem:[%s1531_s17] sm:$0xff] %v429_v61  ;;  %v431_v5 = vmax.f32 %v1476_v15, %v426_v63  ;;  %v428_v11 = vmul.f32 %v411_v1, %v1442_v7  ;;  %445 = sbr.rel (!%p1405_p5) target bundleno = 339 (0x153), region = 40 }
  0xbb   : > { %435 = vst [vmem:[%s1531_s17 + $0x8] sm:$0xff] %v430_v2  ;;  %v432_v12 = vmax.f32 %v422_v4, %v427_v9 }
  0xbc   : > { %436 = vst [vmem:[%s1531_s17 + $0x10] sm:$0xff] %v431_v5  ;;  %v433_v6 = vmax.f32 %v423_v10, %v428_v11 }
  0xbd   : > { %437 = vst [vmem:[%s1531_s17 + $0x18] sm:$0xff] %v432_v12 }
  0xbe   : > { %438 = vst [vmem:[%s1531_s17 + $0x20] sm:$0xff] %v433_v6 }
  0xbf   : > { %s1885_s7 = smov (!%p448_p11, %s447_s7), 5 }
  0xc0   : > { %s1547_s11 = sshll.u32 %s1885_s7, 3 }
  0xc1   : > { %p904_p12 = scmp.eq.s32.totalorder %s1547_s11, 0 }
  0xc2   : > { %p460_p13 = scmp.lt.u32.totalorder (!%p904_p12), %s1547_s11, 8 }
  0xc3   : > { %459 = sbr.rel (%p904_p12) target bundleno = 339 (0x153), region = 44 }
  0xc8   : > { %463 = sbr.rel (%p460_p13) target bundleno = 330 (0x14a), region = 48  ;;  %s1557_s27 = sand.u32 (!%p460_p13), 7, %s1547_s11  }
  0xc9   : > { %p480_p0 = scmp.eq.s32.totalorder (!%p460_p13), %s1557_s27, 0  ;;  %p905_p1 = scmp.ne.s32.totalorder (!%p460_p13), %s1557_s27, 0 }
  0xcd   : > { %483 = sbr.rel (%p905_p1) target bundleno = 265 (0x109), region = 63  ;;  %s484_s20 = sshrl.u32 (!%p905_p1), %s1547_s11, 3 }
  0xce   : > { %s1564_s13 = sshrl.u32 (!%p905_p1), %s484_s20, 5 }
  0xcf   : > { %p906_p2 = scmp.le.s32.totalorder (!%p905_p1), %s1564_s13, 0 }
  0xd2   : > { %799 = sbr.rel (%p906_p2) target bundleno = 248 (0xf8), region = 147  ;;  %s1861_s16 = smov (!%p906_p2), %s1552_s15 }
  0xd3   : > { %s1862_s25 = smov (!%p906_p2), %s1531_s17  ;;  %s1573_s26 = smov (!%p906_p2), 0  }
  0xd4   : > { %s1575_s28 = smov (!%p906_p2), 0  }
  0xd7 LB: >> { %v495_v7 = vld [vmem:[%s1270_s25] sm:$0xff]  ;;  %v497_v0 = vld [vmem:[%s1270_s25 + $0x8] sm:$0xff]  ;;  %v499_v13 = vld [vmem:[%s1270_s25 + $0x10] sm:$0xff]  ;;  %s559_s29 = sadd.s32 1, %s1274_s26  ;;  %s489_s28 = sadd.s32 1, %s1278_s28   ;;  %s1278_s28 = sphi %s1575_s28, %s489_s28   ;;  %s1274_s26 = sphi %s1573_s26, %s1865_s26   ;;  %s1270_s25 = sphi %s1862_s25, %s1864_s25   ;;  %s1266_s16 = sphi %s1861_s16, %s1863_s16  }
  0xd8   : >> { %496 = vst [vmem:[%s1266_s16] sm:$0xff] %v495_v7  ;;  %v501_v14 = vld [vmem:[%s1270_s25 + $0x18] sm:$0xff]  ;;  %p560_p3 = scmp.ge.s32.totalorder %s559_s29, %s1564_s13  ;;  %v503_v15 = vld [vmem:[%s1270_s25 + $0x20] sm:$0xff]  ;;  %v505_v16 = vld [vmem:[%s1270_s25 + $0x28] sm:$0xff]  ;;  %p488_p4 = scmp.ge.s32.totalorder %s489_s28, %s1564_s13 }
  0xd9   : >> { %498 = vst [vmem:[%s1266_s16 + $0x8] sm:$0xff] %v497_v0  ;;  %v507_v17 = vld [vmem:[%s1270_s25 + $0x30] sm:$0xff]  ;;  %v509_v18 = vld [vmem:[%s1270_s25 + $0x38] sm:$0xff]  ;;  %v511_v19 = vld [vmem:[%s1270_s25 + $0x40] sm:$0xff] }
  0xda   : >> { %500 = vst [vmem:[%s1266_s16 + $0x10] sm:$0xff] %v499_v13  ;;  %s1887_s29 = smov (%p560_p3, %s559_s29), 0  ;;  %v513_v20 = vld [vmem:[%s1270_s25 + $0x48] sm:$0xff]  ;;  %v515_v21 = vld [vmem:[%s1270_s25 + $0x50] sm:$0xff]  ;;  %v517_v22 = vld [vmem:[%s1270_s25 + $0x58] sm:$0xff] }
  0xdb   : >> { %502 = vst [vmem:[%s1266_s16 + $0x18] sm:$0xff] %v501_v14  ;;  %s907_s19 = sshll.u32 %s1887_s29, 8  ;;  %v519_v23 = vld [vmem:[%s1270_s25 + $0x60] sm:$0xff]  ;;  %v521_v24 = vld [vmem:[%s1270_s25 + $0x68] sm:$0xff]  ;;  %v523_v25 = vld [vmem:[%s1270_s25 + $0x70] sm:$0xff]  ;;  %s1865_s26 = smov %s1887_s29 }
  0xdc   : >> { %504 = vst [vmem:[%s1266_s16 + $0x20] sm:$0xff] %v503_v15  ;;  %s1607_s30 = scalar_lea.vmem %s1531_s17, %s907_s19 [#allocation3]   ;;  %s1610_s6 = scalar_lea.vmem %s1552_s15, %s907_s19   ;;  %v525_v26 = vld [vmem:[%s1270_s25 + $0x78] sm:$0xff]  ;;  %v527_v27 = vld [vmem:[%s1270_s25 + $0x80] sm:$0xff]  ;;  %v529_v28 = vld [vmem:[%s1270_s25 + $0x88] sm:$0xff] }
  0xdd   : >> { %506 = vst [vmem:[%s1266_s16 + $0x28] sm:$0xff] %v505_v16  ;;  %v531_v29 = vld [vmem:[%s1270_s25 + $0x90] sm:$0xff]  ;;  %v533_v30 = vld [vmem:[%s1270_s25 + $0x98] sm:$0xff]  ;;  %v535_v31 = vld [vmem:[%s1270_s25 + $0xa0] sm:$0xff] }
  0xde   : >> { %508 = vst [vmem:[%s1266_s16 + $0x30] sm:$0xff] %v507_v17  ;;  %v537_v32 = vld [vmem:[%s1270_s25 + $0xa8] sm:$0xff]  ;;  %v539_v33 = vld [vmem:[%s1270_s25 + $0xb0] sm:$0xff]  ;;  %v541_v34 = vld [vmem:[%s1270_s25 + $0xb8] sm:$0xff] }
  0xdf   : >> { %510 = vst [vmem:[%s1266_s16 + $0x38] sm:$0xff] %v509_v18  ;;  %v543_v35 = vld [vmem:[%s1270_s25 + $0xc0] sm:$0xff]  ;;  %v545_v36 = vld [vmem:[%s1270_s25 + $0xc8] sm:$0xff]  ;;  %v547_v37 = vld [vmem:[%s1270_s25 + $0xd0] sm:$0xff] }
  0xe0   : >> { %512 = vst [vmem:[%s1266_s16 + $0x40] sm:$0xff] %v511_v19  ;;  %v549_v38 = vld [vmem:[%s1270_s25 + $0xd8] sm:$0xff]  ;;  %v551_v39 = vld [vmem:[%s1270_s25 + $0xe0] sm:$0xff]  ;;  %v553_v40 = vld [vmem:[%s1270_s25 + $0xe8] sm:$0xff] }
  0xe1   : >> { %514 = vst [vmem:[%s1266_s16 + $0x48] sm:$0xff] %v513_v20  ;;  %v555_v41 = vld [vmem:[%s1270_s25 + $0xf0] sm:$0xff]  ;;  %v557_v42 = vld [vmem:[%s1270_s25 + $0xf8] sm:$0xff]  ;;  %s1864_s25 = smov %s1607_s30 }
  0xe2   : >> { %516 = vst [vmem:[%s1266_s16 + $0x50] sm:$0xff] %v515_v21 }
  0xe3   : >> { %518 = vst [vmem:[%s1266_s16 + $0x58] sm:$0xff] %v517_v22 }
  0xe4   : >> { %520 = vst [vmem:[%s1266_s16 + $0x60] sm:$0xff] %v519_v23 }
  0xe5   : >> { %522 = vst [vmem:[%s1266_s16 + $0x68] sm:$0xff] %v521_v24 }
  0xe6   : >> { %524 = vst [vmem:[%s1266_s16 + $0x70] sm:$0xff] %v523_v25 }
  0xe7   : >> { %526 = vst [vmem:[%s1266_s16 + $0x78] sm:$0xff] %v525_v26 }
  0xe8   : >> { %528 = vst [vmem:[%s1266_s16 + $0x80] sm:$0xff] %v527_v27 }
  0xe9   : >> { %530 = vst [vmem:[%s1266_s16 + $0x88] sm:$0xff] %v529_v28 }
  0xea   : >> { %532 = vst [vmem:[%s1266_s16 + $0x90] sm:$0xff] %v531_v29 }
  0xeb   : >> { %534 = vst [vmem:[%s1266_s16 + $0x98] sm:$0xff] %v533_v30 }
  0xec   : >> { %536 = vst [vmem:[%s1266_s16 + $0xa0] sm:$0xff] %v535_v31 }
  0xed   : >> { %538 = vst [vmem:[%s1266_s16 + $0xa8] sm:$0xff] %v537_v32 }
  0xee   : >> { %540 = vst [vmem:[%s1266_s16 + $0xb0] sm:$0xff] %v539_v33 }
  0xef   : >> { %542 = vst [vmem:[%s1266_s16 + $0xb8] sm:$0xff] %v541_v34 }
  0xf0   : >> { %544 = vst [vmem:[%s1266_s16 + $0xc0] sm:$0xff] %v543_v35 }
  0xf1   : >> { %546 = vst [vmem:[%s1266_s16 + $0xc8] sm:$0xff] %v545_v36 }
  0xf2   : >> { %548 = vst [vmem:[%s1266_s16 + $0xd0] sm:$0xff] %v547_v37 }
  0xf3   : >> { %550 = vst [vmem:[%s1266_s16 + $0xd8] sm:$0xff] %v549_v38  ;;  %491 = sbr.rel (!%p488_p4) target bundleno = 215 (0xd7), region = 153 }
  0xf4   : >> { %552 = vst [vmem:[%s1266_s16 + $0xe0] sm:$0xff] %v551_v39 }
  0xf5   : >> { %554 = vst [vmem:[%s1266_s16 + $0xe8] sm:$0xff] %v553_v40 }
  0xf6   : >> { %556 = vst [vmem:[%s1266_s16 + $0xf0] sm:$0xff] %v555_v41 }
  0xf7   : >> { %558 = vst [vmem:[%s1266_s16 + $0xf8] sm:$0xff] %v557_v42  ;;  %s1863_s16 = smov %s1610_s6 }
  0xf8 PF: > { %s1676_s7 = sand.u32 31, %s484_s20   ;;  %s929_s8 = sshll.u32 %s1564_s13, 8 }
  0xf9   : > { %s570_s9 = scalar_lea.vmem %s1531_s17, %s929_s8 [#allocation3]   ;;  %s572_s10 = scalar_lea.vmem %s1552_s15, %s929_s8  }
  0xfa   : > { %p912_p5 = scmp.le.s32.totalorder %s1676_s7, 0 }
  0xfb   : > { %s1280_s12 = smov (!%p912_p5), %s572_s10   ;;  %s1284_s14 = smov (!%p912_p5), %s570_s9  }
  0xfc   : > { %813 = sbr.rel (%p912_p5) target bundleno = 265 (0x109), region = 158  ;;  %s1288_s29 = smov (!%p912_p5), 0  }
  0xfd   : > { %s1292_s19 = smov (!%p912_p5), 0  }
 0x101 LB: >> { %v582_v43 = vld [vmem:[%s1286_s14] sm:$0xff]  ;;  %s584_s20 = sadd.s32 1, %s1290_s29  ;;  %s576_s19 = sadd.s32 1, %s1294_s19   ;;  %s1294_s19 = sphi %s1292_s19, %s576_s19   ;;  %s1290_s29 = sphi %s1288_s29, %s1289_s29   ;;  %s1286_s14 = sphi %s1284_s14, %s589_s14   ;;  %s1282_s12 = sphi %s1280_s12, %s590_s12  }
 0x102   : >> { %583 = vst [vmem:[%s1282_s12] sm:$0xff] %v582_v43  ;;  %p585_p6 = scmp.ge.s32.totalorder %s584_s20, %s1676_s7  ;;  %p575_p7 = scmp.ge.s32.totalorder %s576_s19, %s1676_s7 }
 0x104   : >> { %s1889_s20 = smov (%p585_p6, %s584_s20), 0  ;;  %578 = sbr.rel (!%p575_p7) target bundleno = 257 (0x101), region = 164 }
 0x105   : >> { %s913_s13 = sshll.u32 %s1889_s20, 3  ;;  %s1289_s29 = smov %s1889_s20  }
 0x106   : >> { %s589_s14 = scalar_lea.vmem %s570_s9, %s913_s13 [#allocation3]   ;;  %s590_s12 = scalar_lea.vmem %s572_s10, %s913_s13  }
 0x109 PF: > { %593 = sbr.rel (%p480_p0) target bundleno = 330 (0x14a), region = 81  ;;  %s1688_s16 = ssub.s32 (!%p480_p0), %s1547_s11, %s1557_s27 }
 0x10a   : > { %s599_s25 = sshrl.u32 (!%p480_p0), %s1547_s11, 3  ;;  %s596_s26 = scalar_lea.vmem (!%p480_p0), %s1531_s17, %s1688_s16 [#allocation3] }
 0x10b   : > { %s1697_s30 = sshrl.u32 (!%p480_p0), %s599_s25, 5 }
 0x10c   : > { %p915_p8 = scmp.le.s32.totalorder (!%p480_p0), %s1697_s30, 0 }
 0x10e   : > { %827 = sbr.rel (%p915_p8) target bundleno = 308 (0x134), region = 169  ;;  %s1866_s6 = smov (!%p915_p8), %s1552_s15 }
 0x10f   : > { %s1867_s7 = smov (!%p915_p8), %s1531_s17  ;;  %s1706_s8 = smov (!%p915_p8), 0  }
 0x110   : > { %s1708_s9 = smov (!%p915_p8), 0  }
 0x113 LB: >> { %v610_v44 = vld [vmem:[%s1302_s7] sm:$0xff]  ;;  %v612_v45 = vld [vmem:[%s1302_s7 + $0x8] sm:$0xff]  ;;  %v614_v46 = vld [vmem:[%s1302_s7 + $0x10] sm:$0xff]  ;;  %s674_s10 = sadd.s32 1, %s1306_s8  ;;  %s604_s9 = sadd.s32 1, %s1310_s9   ;;  %s1310_s9 = sphi %s1708_s9, %s604_s9   ;;  %s1306_s8 = sphi %s1706_s8, %s1870_s8   ;;  %s1302_s7 = sphi %s1867_s7, %s1869_s7   ;;  %s1298_s6 = sphi %s1866_s6, %s1868_s6  }
 0x114   : >> { %611 = vst [vmem:[%s1298_s6] sm:$0xff] %v610_v44  ;;  %v616_v47 = vld [vmem:[%s1302_s7 + $0x18] sm:$0xff]  ;;  %p675_p9 = scmp.ge.s32.totalorder %s674_s10, %s1697_s30  ;;  %v618_v48 = vld [vmem:[%s1302_s7 + $0x20] sm:$0xff]  ;;  %v620_v49 = vld [vmem:[%s1302_s7 + $0x28] sm:$0xff]  ;;  %p603_p10 = scmp.ge.s32.totalorder %s604_s9, %s1697_s30 }
 0x115   : >> { %613 = vst [vmem:[%s1298_s6 + $0x8] sm:$0xff] %v612_v45  ;;  %v622_v50 = vld [vmem:[%s1302_s7 + $0x30] sm:$0xff]  ;;  %v624_v51 = vld [vmem:[%s1302_s7 + $0x38] sm:$0xff]  ;;  %v626_v52 = vld [vmem:[%s1302_s7 + $0x40] sm:$0xff] }
 0x116   : >> { %615 = vst [vmem:[%s1298_s6 + $0x10] sm:$0xff] %v614_v46  ;;  %s1891_s10 = smov (%p675_p9, %s674_s10), 0  ;;  %v628_v53 = vld [vmem:[%s1302_s7 + $0x48] sm:$0xff]  ;;  %v630_v54 = vld [vmem:[%s1302_s7 + $0x50] sm:$0xff]  ;;  %v632_v55 = vld [vmem:[%s1302_s7 + $0x58] sm:$0xff] }
 0x117   : >> { %617 = vst [vmem:[%s1298_s6 + $0x18] sm:$0xff] %v616_v47  ;;  %s916_s12 = sshll.u32 %s1891_s10, 8  ;;  %v634_v56 = vld [vmem:[%s1302_s7 + $0x60] sm:$0xff]  ;;  %v636_v57 = vld [vmem:[%s1302_s7 + $0x68] sm:$0xff]  ;;  %v638_v58 = vld [vmem:[%s1302_s7 + $0x70] sm:$0xff]  ;;  %s1870_s8 = smov %s1891_s10 }
 0x118   : >> { %619 = vst [vmem:[%s1298_s6 + $0x20] sm:$0xff] %v618_v48  ;;  %s1740_s14 = scalar_lea.vmem %s1531_s17, %s916_s12 [#allocation3]   ;;  %s1743_s29 = scalar_lea.vmem %s1552_s15, %s916_s12   ;;  %v640_v59 = vld [vmem:[%s1302_s7 + $0x78] sm:$0xff]  ;;  %v642_v60 = vld [vmem:[%s1302_s7 + $0x80] sm:$0xff]  ;;  %v644_v61 = vld [vmem:[%s1302_s7 + $0x88] sm:$0xff] }
 0x119   : >> { %621 = vst [vmem:[%s1298_s6 + $0x28] sm:$0xff] %v620_v49  ;;  %v646_v62 = vld [vmem:[%s1302_s7 + $0x90] sm:$0xff]  ;;  %v648_v3 = vld [vmem:[%s1302_s7 + $0x98] sm:$0xff]  ;;  %v650_v63 = vld [vmem:[%s1302_s7 + $0xa0] sm:$0xff] }
 0x11a   : >> { %623 = vst [vmem:[%s1298_s6 + $0x30] sm:$0xff] %v622_v50  ;;  %v652_v2 = vld [vmem:[%s1302_s7 + $0xa8] sm:$0xff]  ;;  %v654_v8 = vld [vmem:[%s1302_s7 + $0xb0] sm:$0xff]  ;;  %v656_v4 = vld [vmem:[%s1302_s7 + $0xb8] sm:$0xff] }
 0x11b   : >> { %625 = vst [vmem:[%s1298_s6 + $0x38] sm:$0xff] %v624_v51  ;;  %v658_v9 = vld [vmem:[%s1302_s7 + $0xc0] sm:$0xff]  ;;  %v660_v1 = vld [vmem:[%s1302_s7 + $0xc8] sm:$0xff]  ;;  %v662_v5 = vld [vmem:[%s1302_s7 + $0xd0] sm:$0xff] }
 0x11c   : >> { %627 = vst [vmem:[%s1298_s6 + $0x40] sm:$0xff] %v626_v52  ;;  %v664_v10 = vld [vmem:[%s1302_s7 + $0xd8] sm:$0xff]  ;;  %v666_v11 = vld [vmem:[%s1302_s7 + $0xe0] sm:$0xff]  ;;  %v668_v12 = vld [vmem:[%s1302_s7 + $0xe8] sm:$0xff] }
 0x11d   : >> { %629 = vst [vmem:[%s1298_s6 + $0x48] sm:$0xff] %v628_v53  ;;  %v670_v6 = vld [vmem:[%s1302_s7 + $0xf0] sm:$0xff]  ;;  %v672_v7 = vld [vmem:[%s1302_s7 + $0xf8] sm:$0xff]  ;;  %s1869_s7 = smov %s1740_s14 }
 0x11e   : >> { %631 = vst [vmem:[%s1298_s6 + $0x50] sm:$0xff] %v630_v54 }
 0x11f   : >> { %633 = vst [vmem:[%s1298_s6 + $0x58] sm:$0xff] %v632_v55 }
 0x120   : >> { %635 = vst [vmem:[%s1298_s6 + $0x60] sm:$0xff] %v634_v56 }
 0x121   : >> { %637 = vst [vmem:[%s1298_s6 + $0x68] sm:$0xff] %v636_v57 }
 0x122   : >> { %639 = vst [vmem:[%s1298_s6 + $0x70] sm:$0xff] %v638_v58 }
 0x123   : >> { %641 = vst [vmem:[%s1298_s6 + $0x78] sm:$0xff] %v640_v59 }
 0x124   : >> { %643 = vst [vmem:[%s1298_s6 + $0x80] sm:$0xff] %v642_v60 }
 0x125   : >> { %645 = vst [vmem:[%s1298_s6 + $0x88] sm:$0xff] %v644_v61 }
 0x126   : >> { %647 = vst [vmem:[%s1298_s6 + $0x90] sm:$0xff] %v646_v62 }
 0x127   : >> { %649 = vst [vmem:[%s1298_s6 + $0x98] sm:$0xff] %v648_v3 }
 0x128   : >> { %651 = vst [vmem:[%s1298_s6 + $0xa0] sm:$0xff] %v650_v63 }
 0x129   : >> { %653 = vst [vmem:[%s1298_s6 + $0xa8] sm:$0xff] %v652_v2 }
 0x12a   : >> { %655 = vst [vmem:[%s1298_s6 + $0xb0] sm:$0xff] %v654_v8 }
 0x12b   : >> { %657 = vst [vmem:[%s1298_s6 + $0xb8] sm:$0xff] %v656_v4 }
 0x12c   : >> { %659 = vst [vmem:[%s1298_s6 + $0xc0] sm:$0xff] %v658_v9 }
 0x12d   : >> { %661 = vst [vmem:[%s1298_s6 + $0xc8] sm:$0xff] %v660_v1 }
 0x12e   : >> { %663 = vst [vmem:[%s1298_s6 + $0xd0] sm:$0xff] %v662_v5 }
 0x12f   : >> { %665 = vst [vmem:[%s1298_s6 + $0xd8] sm:$0xff] %v664_v10  ;;  %606 = sbr.rel (!%p603_p10) target bundleno = 275 (0x113), region = 175 }
 0x130   : >> { %667 = vst [vmem:[%s1298_s6 + $0xe0] sm:$0xff] %v666_v11 }
 0x131   : >> { %669 = vst [vmem:[%s1298_s6 + $0xe8] sm:$0xff] %v668_v12 }
 0x132   : >> { %671 = vst [vmem:[%s1298_s6 + $0xf0] sm:$0xff] %v670_v6 }
 0x133   : >> { %673 = vst [vmem:[%s1298_s6 + $0xf8] sm:$0xff] %v672_v7  ;;  %s1868_s6 = smov %s1743_s29 }
 0x134 PF: > { %s1809_s19 = sand.u32 31, %s599_s25   ;;  %s931_s20 = sshll.u32 %s1697_s30, 8 }
 0x135   : > { %s685_s13 = scalar_lea.vmem %s1531_s17, %s931_s20 [#allocation3]   ;;  %s687_s12 = scalar_lea.vmem %s1552_s15, %s931_s20  }
 0x136   : > { %p921_p11 = scmp.le.s32.totalorder %s1809_s19, 0 }
 0x137   : > { %s1312_s14 = smov (!%p921_p11), %s687_s12   ;;  %s1316_s29 = smov (!%p921_p11), %s685_s13  }
 0x138   : > { %841 = sbr.rel (%p921_p11) target bundleno = 325 (0x145), region = 180  ;;  %s1320_s10 = smov (!%p921_p11), 0  }
 0x139   : > { %s1324_s28 = smov (!%p921_p11), 0  }
 0x13d LB: >> { %v697_v0 = vld [vmem:[%s1318_s29] sm:$0xff]  ;;  %s699_s25 = sadd.s32 1, %s1322_s10  ;;  %s691_s28 = sadd.s32 1, %s1326_s28   ;;  %s1326_s28 = sphi %s1324_s28, %s691_s28   ;;  %s1322_s10 = sphi %s1320_s10, %s1321_s10   ;;  %s1318_s29 = sphi %s1316_s29, %s704_s29   ;;  %s1314_s14 = sphi %s1312_s14, %s705_s14  }
 0x13e   : >> { %698 = vst [vmem:[%s1314_s14] sm:$0xff] %v697_v0  ;;  %p700_p12 = scmp.ge.s32.totalorder %s699_s25, %s1809_s19  ;;  %p690_p13 = scmp.ge.s32.totalorder %s691_s28, %s1809_s19 }
 0x140   : >> { %s1893_s25 = smov (%p700_p12, %s699_s25), 0  ;;  %693 = sbr.rel (!%p690_p13) target bundleno = 317 (0x13d), region = 186 }
 0x141   : >> { %s922_s30 = sshll.u32 %s1893_s25, 3  ;;  %s1321_s10 = smov %s1893_s25  }
 0x142   : >> { %s704_s29 = scalar_lea.vmem %s685_s13, %s922_s30 [#allocation3]   ;;  %s705_s14 = scalar_lea.vmem %s687_s12, %s922_s30  }
 0x145 PF: > { %s1329_s6 = smov 1   ;;  %s1871_s9 = scalar_lea.vmem %s1552_s15, %s1688_s16 }
 0x146   : > { %s706_s7 = sshll.u32 %s1329_s6, %s1557_s27 }
 0x147   : > { %s924_s8 = sadd.s32 4294967295, %s706_s7 }
 0x148   : > { %v716_v13 = vld [vmem:[%s596_s26] sm:%s924_s8] }
 0x149   : > { %717 = vst [vmem:[%s1871_s9] sm:%s924_s8] %v716_v13 }
 0x14a PF: > { %p925_p0 = scmp.ge.u32.totalorder %s1547_s11, 8 }
 0x14b   : > { %s1330_s28 = smov (!%p925_p0), 1  }
 0x14c   : > { %466 = sbr.rel (%p925_p0) target bundleno = 339 (0x153), region = 52  ;;  %s467_s19 = sshll.u32 (!%p925_p0), %s1330_s28, %s1547_s11 }
 0x14d   : > { %s926_s20 = sadd.s32 (!%p925_p0), 4294967295, %s467_s19 }
 0x151   : > { %v477_v14 = vld [vmem:[%s1531_s17] sm:%s926_s20] }
 0x152   : > { %478 = vst [vmem:[%s1552_s15] sm:%s926_s20] %v477_v14 }
 0x153 PF: > { %s15_s23 = sadd.s32 1, %s1262_s23   ;;  %s1872_s17 = smov %s1242_s18 }
 0x154   : > { %p12_p1 = scmp.ge.s32.totalorder %s15_s23, 6   ;;  %s1873_s18 = smov %s1416_s5 }
 0x155   : > { %s1874_s19 = smov %s1254_s21  ;;  %s1875_s20 = smov %s1258_s22 }
 0x156   : > { %s1876_s21 = smov %s1879_s3  ;;  %s1877_s22 = smov %s1883_s24 }
 0x157   :  { %14 = sbr.rel (!%p12_p1) target bundleno = 6 (0x6), region = 197 }

</bundles_post_ra>
